<compile_context>
chip_gen: v6e
topology: v6e:2x2x1
jax: 0.10.0
libtpu: 0.0.40
codegen_flags: <defaults>
</compile_context>

<pallas_src>
import jax
import jax.numpy as jnp
from jax import lax
from jax.experimental import pallas as pl
from jax.experimental.pallas import tpu as pltpu

LANE = 128   # TPU lane width
SUB = 8      # f32 sublane tile


def _cdiv(a, b):
    return -(-a // b)


def _round_up(a, b):
    return _cdiv(a, b) * b


def _num_tensorcores():
    """Best-effort count of TensorCores a single pallas_call can shard over."""
    try:
        kind = jax.devices()[0].device_kind.lower()
    except Exception:
        return 1
    # v7x exposes 2 TensorCores per chip; v5e/v6e have 1 (megacore chips are not
    # in the optimization targets and safely fall back to 1).
    if "v7" in kind:
        return 2
    return 1


def _sublane_multiple(*arrays):
    """Sublane granularity keeping every stream's block tiling legal
    (f32/i32 -> 8, bf16/f16 -> 16, int8/bool -> 32)."""
    m = SUB
    for a in arrays:
        itemsize = max(1, jnp.dtype(a.dtype).itemsize)
        m = max(m, (4 // min(4, itemsize)) * SUB)
    return m


def _make_kernel(rows, rpt, chunk, steps_per_core):
    n_chunks = rpt // chunk

    def kernel(x_ref, y_ref, m_ref, acc_ref):
        c = pl.program_id(0)
        i = pl.program_id(1)

        @pl.when(i == 0)
        def _init():
            acc_ref[...] = jnp.zeros_like(acc_ref)

        row_start = (c * steps_per_core + i) * rpt

        def accumulate(mask_rows):
            # Single load/store of the one-vreg accumulator per grid step; the
            # fully-unrolled static-offset chunk loop keeps only a few vregs of
            # x/y/m live at a time (no (rpt,128) f32 intermediate in VMEM).
            acc = acc_ref[...]
            if mask_rows:
                rid0 = lax.broadcasted_iota(jnp.int32, (chunk, 1), 0)  # hoisted
            for ci in range(n_chunks):
                off = ci * chunk
                xv = x_ref[off:off + chunk, :].astype(jnp.float32)
                yv = y_ref[off:off + chunk, :].astype(jnp.float32)
                mv = m_ref[off:off + chunk, :].astype(jnp.float32)
                # Faithful to nn.L1Loss(x*mask, y*mask): exact for any float mask.
                d = jnp.abs(xv * mv - yv * mv)
                if mask_rows:
                    rid = row_start + off + rid0
                    d = jnp.where(rid < rows, d, 0.0)  # select drops garbage rows
                acc = acc + d.reshape(chunk // SUB, SUB, LANE).sum(axis=0)
            acc_ref[...] = acc

        # Interior blocks: completely unmasked (no iota / compare / select work).
        @pl.when(row_start + rpt <= rows)
        def _interior():
            accumulate(False)

        # Edge blocks (partial last block) and clamped overshoot blocks.
        @pl.when(row_start + rpt > rows)
        def _edge():
            accumulate(True)

    return kernel


def mask_loss(x, y, mask, *, rows_per_tile=4096, num_par=None):
    """JAX/Pallas equivalent of the PyTorch mask_loss forward pass.

    Returns a float32 scalar: mean over ALL elements of |x*mask - y*mask|.
    `mask` may be float, bool or int8 (narrow dtypes stay narrow into the kernel).
    """
    assert x.shape == y.shape == mask.shape
    n_elem = int(x.size)
    f32 = jnp.float32

    xf, yf, mf = x.reshape(-1), y.reshape(-1), mask.reshape(-1)

    def jnp_l1_sum(a, b, m):
        a, b, m = a.astype(f32), b.astype(f32), m.astype(f32)
        return jnp.sum(jnp.abs(a * m - b * m))

    n_main = (n_elem // LANE) * LANE
    tail = n_elem - n_main
    rows = n_main // LANE
    submult = _sublane_multiple(x, y, mask)

    if rows < submult:
        # Too small to be worth a kernel launch (also keeps block tiling legal).
        return jnp_l1_sum(xf, yf, mf) / f32(n_elem)

    # <128-element ragged tail folded in with a tiny jnp expression instead of
    # zero-padding (full read+write copy) all three inputs.
    tail_sum = jnp_l1_sum(xf[n_main:], yf[n_main:], mf[n_main:]) if tail else f32(0.0)
    # TODO(synk): in the ragged case the prefix slice may still copy; a manual-DMA
    # ragged tail inside the kernel would avoid it entirely.

    def to_slab(a):
        if tail:
            a = a[:n_main]
        return a.reshape(rows, LANE)   # free for contiguous, lane-aligned inputs

    xs, ys, ms = to_slab(xf), to_slab(yf), to_slab(mf)

    # --- tiling ------------------------------------------------------------
    rpt = min(_round_up(rows_per_tile, submult), (rows // submult) * submult)
    rpt = max(rpt, submult)
    chunk = rpt
    for cand in (64, 32, 16, 8):
        if rpt % cand == 0:
            chunk = cand
            break

    total_blocks = _cdiv(rows, rpt)
    if num_par is None:
        num_par = _num_tensorcores()
    num_par = max(1, min(num_par, total_blocks))     # never waste passes on 1-TC chips
    steps_per_core = _cdiv(total_blocks, num_par)

    def in_map(c, i):
        # Clamp: a core whose logical range overshoots re-reads an in-bounds block;
        # its contribution is fully masked to zero inside the kernel.
        return (jnp.minimum(c * steps_per_core + i, total_blocks - 1), 0)

    kernel = _make_kernel(rows, rpt, chunk, steps_per_core)

    cost = pl.CostEstimate(
        flops=5 * n_main,
        transcendentals=0,
        bytes_accessed=int(xs.nbytes + ys.nbytes + ms.nbytes) + num_par * SUB * LANE * 4,
    )

    outer_sem = pltpu.CORE_PARALLEL if num_par > 1 else pltpu.ARBITRARY

    partials = pl.pallas_call(
        kernel,
        out_shape=jax.ShapeDtypeStruct((num_par, SUB, LANE), jnp.float32),
        grid_spec=pltpu.PrefetchScalarGridSpec(
            num_scalar_prefetch=0,
            grid=(num_par, steps_per_core),
            in_specs=[
                pl.BlockSpec((rpt, LANE), in_map),
                pl.BlockSpec((rpt, LANE), in_map),
                pl.BlockSpec((rpt, LANE), in_map),
            ],
            out_specs=pl.BlockSpec((None, SUB, LANE), lambda c, i: (c, 0, 0)),
        ),
        compiler_params=pltpu.CompilerParams(
            # Outer axis shards across TensorCores on 2-TC chips (v7x); inner axis
            # is the serial reduction (accumulator block resident across it).
            dimension_semantics=(outer_sem, pltpu.ARBITRARY),
            vmem_limit_bytes=48 * 1024 * 1024,
        ),
        cost_estimate=cost,
    )(xs, ys, ms)

    # Single cross-lane/sublane reduce + L1Loss 'mean' over the TRUE element count.
    return (jnp.sum(partials) + tail_sum) / f32(n_elem)


if __name__ == "__main__":
    key = jax.random.PRNGKey(0)
    k1, k2, k3, k4, k5, k6 = jax.random.split(key, 6)

    # Primary: small NCHW image-style inputs with a float 0/1 mask.
    shape = (2, 4, 16, 16)
    x = jax.random.normal(k1, shape, dtype=jnp.float32)
    y = jax.random.normal(k2, shape, dtype=jnp.float32)
    mask = (jax.random.uniform(k3, shape) > 0.5).astype(jnp.float32)
    out = jax.block_until_ready(mask_loss(x, y, mask))
    ref = jnp.mean(jnp.abs(x * mask - y * mask))
    assert jnp.allclose(out, ref, rtol=1e-5, atol=1e-6), (out, ref)

    # Narrow-dtype mask: int8 stays narrow into the kernel (f32 cast in VMEM),
    # cutting HBM traffic from 12 B/elem to 9 B/elem.
    shape2 = (2, 4, 32, 32)
    x2 = jax.random.normal(k4, shape2, dtype=jnp.float32)
    y2 = jax.random.normal(k5, shape2, dtype=jnp.float32)
    m2 = (jax.random.uniform(k6, shape2) > 0.5).astype(jnp.int8)
    out2 = jax.block_until_ready(mask_loss(x2, y2, m2))
    m2f = m2.astype(jnp.float32)
    ref2 = jnp.mean(jnp.abs(x2 * m2f - y2 * m2f))
    assert jnp.allclose(out2, ref2, rtol=1e-5, atol=1e-6), (out2, ref2)

    # Ragged element count: exercises partial-edge-block masking in-kernel and the
    # <128-element tail folded in the wrapper (no zero-pad copies).
    shape3 = (3, 5, 7, 11)   # 1155 elements
    x3 = jax.random.normal(k1, shape3, dtype=jnp.float32)
    y3 = jax.random.normal(k2, shape3, dtype=jnp.float32)
    m3 = (jax.random.uniform(k3, shape3) > 0.5).astype(jnp.float32)
    out3 = jax.block_until_ready(mask_loss(x3, y3, m3))
    ref3 = jnp.mean(jnp.abs(x3 * m3 - y3 * m3))
    assert jnp.allclose(out3, ref3, rtol=1e-5, atol=1e-6), (out3, ref3)

    print("KERNEL_OK")
</pallas_src>

<mosaic_0001>
module attributes {stable_mosaic.version = 11 : i64} {
  func.func @kernel(%arg0: i32, %arg1: i32, %arg2: memref<16x128xf32, #tpu.memory_space<vmem>>, %arg3: memref<16x128xf32, #tpu.memory_space<vmem>>, %arg4: memref<16x128xf32, #tpu.memory_space<vmem>>, %arg5: memref<1x8x128xf32, #tpu.memory_space<vmem>>) attributes {dimension_semantics = [#tpu.dimension_semantics<arbitrary>, #tpu.dimension_semantics<arbitrary>], iteration_bounds = array<i64: 1, 1>, scalar_prefetch = 0 : i64, scratch_operands = 0 : i64, tpu.core_type = #tpu.core_type<tc>, window_params = [{transform_indices = @transform_0, window_bounds = array<i64: 16, 128>}, {transform_indices = @transform_1, window_bounds = array<i64: 16, 128>}, {transform_indices = @transform_2, window_bounds = array<i64: 16, 128>}, {transform_indices = @transform_3, window_bounds = array<i64: 1, 8, 128>}]} {
    %c0_i32 = arith.constant 0 : i32
    %0 = arith.cmpi eq, %arg1, %c0_i32 : i32
    %1 = arith.extui %0 : i1 to i32
    %c0_i32_0 = arith.constant 0 : i32
    %2 = arith.cmpi ne, %1, %c0_i32_0 : i32
    scf.if %2 {
      %cst = arith.constant 0.000000e+00 : f32
      %14 = vector.broadcast %cst : f32 to vector<8x128xf32>
      %c0 = arith.constant 0 : index
      %c0_7 = arith.constant 0 : index
      %c0_8 = arith.constant 0 : index
      %15 = vector.load %arg5[%c0, %c0_7, %c0_8] : memref<1x8x128xf32, #tpu.memory_space<vmem>>, vector<1x8x128xf32>
      %16 = vector.shape_cast %15 : vector<1x8x128xf32> to vector<8x128xf32>
      %17 = vector.shape_cast %14 : vector<8x128xf32> to vector<1x8x128xf32>
      tpu.vector_store %arg5[%c0, %c0_7, %c0_8], %17 {strides = array<i32>} : memref<1x8x128xf32, #tpu.memory_space<vmem>>, vector<1x8x128xf32>,
    } else {
    }
    %c1_i32 = arith.constant 1 : i32
    %3 = arith.muli %arg0, %c1_i32 : i32
    %4 = arith.addi %3, %arg1 : i32
    %c16_i32 = arith.constant 16 : i32
    %5 = arith.muli %4, %c16_i32 : i32
    %c16_i32_1 = arith.constant 16 : i32
    %6 = arith.addi %5, %c16_i32_1 : i32
    %c16_i32_2 = arith.constant 16 : i32
    %7 = arith.cmpi sle, %6, %c16_i32_2 : i32
    %8 = arith.extui %7 : i1 to i32
    %c0_i32_3 = arith.constant 0 : i32
    %9 = arith.cmpi ne, %8, %c0_i32_3 : i32
    scf.if %9 {
      %c0 = arith.constant 0 : index
      %c0_7 = arith.constant 0 : index
      %c0_8 = arith.constant 0 : index
      %14 = vector.load %arg5[%c0, %c0_7, %c0_8] : memref<1x8x128xf32, #tpu.memory_space<vmem>>, vector<1x8x128xf32>
      %15 = vector.shape_cast %14 : vector<1x8x128xf32> to vector<8x128xf32>
      %c0_9 = arith.constant 0 : index
      %c0_10 = arith.constant 0 : index
      %16 = vector.load %arg2[%c0_9, %c0_10] : memref<16x128xf32, #tpu.memory_space<vmem>>, vector<16x128xf32>
      %c0_11 = arith.constant 0 : index
      %c0_12 = arith.constant 0 : index
      %17 = vector.load %arg3[%c0_11, %c0_12] : memref<16x128xf32, #tpu.memory_space<vmem>>, vector<16x128xf32>
      %c0_13 = arith.constant 0 : index
      %c0_14 = arith.constant 0 : index
      %18 = vector.load %arg4[%c0_13, %c0_14] : memref<16x128xf32, #tpu.memory_space<vmem>>, vector<16x128xf32>
      %19 = arith.mulf %16, %18 : vector<16x128xf32>
      %20 = arith.mulf %17, %18 : vector<16x128xf32>
      %21 = arith.subf %19, %20 : vector<16x128xf32>
      %22 = math.absf %21 : vector<16x128xf32>
      %23 = vector.shape_cast %22 : vector<16x128xf32> to vector<2x8x128xf32>
      %cst = arith.constant dense<0.000000e+00> : vector<8x128xf32>
      %24 = vector.multi_reduction <add>, %23, %cst [0] : vector<2x8x128xf32> to vector<8x128xf32>
      %25 = arith.addf %15, %24 : vector<8x128xf32>
      %c0_15 = arith.constant 0 : index
      %c0_16 = arith.constant 0 : index
      %c0_17 = arith.constant 0 : index
      %26 = vector.load %arg5[%c0_15, %c0_16, %c0_17] : memref<1x8x128xf32, #tpu.memory_space<vmem>>, vector<1x8x128xf32>
      %27 = vector.shape_cast %26 : vector<1x8x128xf32> to vector<8x128xf32>
      %28 = vector.shape_cast %25 : vector<8x128xf32> to vector<1x8x128xf32>
      tpu.vector_store %arg5[%c0_15, %c0_16, %c0_17], %28 {strides = array<i32>} : memref<1x8x128xf32, #tpu.memory_space<vmem>>, vector<1x8x128xf32>,
    } else {
    }
    %c16_i32_4 = arith.constant 16 : i32
    %10 = arith.addi %5, %c16_i32_4 : i32
    %c16_i32_5 = arith.constant 16 : i32
    %11 = arith.cmpi sgt, %10, %c16_i32_5 : i32
    %12 = arith.extui %11 : i1 to i32
    %c0_i32_6 = arith.constant 0 : i32
    %13 = arith.cmpi ne, %12, %c0_i32_6 : i32
    scf.if %13 {
      %c0 = arith.constant 0 : index
      %c0_7 = arith.constant 0 : index
      %c0_8 = arith.constant 0 : index
      %14 = vector.load %arg5[%c0, %c0_7, %c0_8] : memref<1x8x128xf32, #tpu.memory_space<vmem>>, vector<1x8x128xf32>
      %15 = vector.shape_cast %14 : vector<1x8x128xf32> to vector<8x128xf32>
      %16 = tpu.iota {dimensions = array<i32: 0>} : vector<16x1xi32>
      %c0_9 = arith.constant 0 : index
      %c0_10 = arith.constant 0 : index
      %17 = vector.load %arg2[%c0_9, %c0_10] : memref<16x128xf32, #tpu.memory_space<vmem>>, vector<16x128xf32>
      %c0_11 = arith.constant 0 : index
      %c0_12 = arith.constant 0 : index
      %18 = vector.load %arg3[%c0_11, %c0_12] : memref<16x128xf32, #tpu.memory_space<vmem>>, vector<16x128xf32>
      %c0_13 = arith.constant 0 : index
      %c0_14 = arith.constant 0 : index
      %19 = vector.load %arg4[%c0_13, %c0_14] : memref<16x128xf32, #tpu.memory_space<vmem>>, vector<16x128xf32>
      %20 = arith.mulf %17, %19 : vector<16x128xf32>
      %21 = arith.mulf %18, %19 : vector<16x128xf32>
      %22 = arith.subf %20, %21 : vector<16x128xf32>
      %23 = math.absf %22 : vector<16x128xf32>
      %c0_i32_15 = arith.constant 0 : i32
      %24 = arith.addi %5, %c0_i32_15 : i32
      %25 = vector.broadcast %24 : i32 to vector<16x1xi32>
      %26 = arith.addi %25, %16 : vector<16x1xi32>
      %c16_i32_16 = arith.constant 16 : i32
      %27 = vector.broadcast %c16_i32_16 : i32 to vector<16x1xi32>
      %28 = arith.cmpi slt, %26, %27 : vector<16x1xi32>
      %cst = arith.constant 0.000000e+00 : f32
      %29 = vector.shape_cast %28 : vector<16x1xi1> to vector<16x1xi1>
      %30 = vector.broadcast %29 : vector<16x1xi1> to vector<16x128xi1>
      %31 = vector.broadcast %cst : f32 to vector<16x128xf32>
      %32 = arith.select %30, %23, %31 : vector<16x128xi1>, vector<16x128xf32>
      %33 = vector.shape_cast %32 : vector<16x128xf32> to vector<2x8x128xf32>
      %cst_17 = arith.constant dense<0.000000e+00> : vector<8x128xf32>
      %34 = vector.multi_reduction <add>, %33, %cst_17 [0] : vector<2x8x128xf32> to vector<8x128xf32>
      %35 = arith.addf %15, %34 : vector<8x128xf32>
      %c0_18 = arith.constant 0 : index
      %c0_19 = arith.constant 0 : index
      %c0_20 = arith.constant 0 : index
      %36 = vector.load %arg5[%c0_18, %c0_19, %c0_20] : memref<1x8x128xf32, #tpu.memory_space<vmem>>, vector<1x8x128xf32>
      %37 = vector.shape_cast %36 : vector<1x8x128xf32> to vector<8x128xf32>
      %38 = vector.shape_cast %35 : vector<8x128xf32> to vector<1x8x128xf32>
      tpu.vector_store %arg5[%c0_18, %c0_19, %c0_20], %38 {strides = array<i32>} : memref<1x8x128xf32, #tpu.memory_space<vmem>>, vector<1x8x128xf32>,
    } else {
    }
    return
  }
  func.func @transform_0(%arg0: i32, %arg1: i32) -> (i32, i32) {
    %c1_i32 = arith.constant 1 : i32
    %0 = arith.muli %arg0, %c1_i32 : i32
    %1 = arith.addi %0, %arg1 : i32
    %c0_i32 = arith.constant 0 : i32
    %2 = arith.minsi %1, %c0_i32 : i32
    %c0_i32_0 = arith.constant 0 : i32
    %c0_i32_1 = arith.constant 0 : i32
    return %2, %c0_i32_0 : i32, i32
  }
  func.func @transform_1(%arg0: i32, %arg1: i32) -> (i32, i32) {
    %c1_i32 = arith.constant 1 : i32
    %0 = arith.muli %arg0, %c1_i32 : i32
    %1 = arith.addi %0, %arg1 : i32
    %c0_i32 = arith.constant 0 : i32
    %2 = arith.minsi %1, %c0_i32 : i32
    %c0_i32_0 = arith.constant 0 : i32
    %c0_i32_1 = arith.constant 0 : i32
    return %2, %c0_i32_0 : i32, i32
  }
  func.func @transform_2(%arg0: i32, %arg1: i32) -> (i32, i32) {
    %c1_i32 = arith.constant 1 : i32
    %0 = arith.muli %arg0, %c1_i32 : i32
    %1 = arith.addi %0, %arg1 : i32
    %c0_i32 = arith.constant 0 : i32
    %2 = arith.minsi %1, %c0_i32 : i32
    %c0_i32_0 = arith.constant 0 : i32
    %c0_i32_1 = arith.constant 0 : i32
    return %2, %c0_i32_0 : i32, i32
  }
  func.func @transform_3(%arg0: i32, %arg1: i32) -> (i32, i32, i32) {
    %c0_i32 = arith.constant 0 : i32
    %c0_i32_0 = arith.constant 0 : i32
    %c0_i32_1 = arith.constant 0 : i32
    return %arg0, %c0_i32, %c0_i32_0 : i32, i32, i32
  }
}

</mosaic_0001>

<bundles_post_ra>
// kernel: tpu_custom_call.1
= control target key start
LH: loop header
LB: loop body
LE: loop exit
PB: predicated region body
PF: predicated region fallthrough
CT: control target
= control target key end

     0   :  { %8 = vsyncpa [#allocation3], 0  ;;  %s305_s0 = inlined_call_operand.hbm [shape: f32[16,128], index: 0, kind: input, shape index: {}]   ;;  %s306_s1 = inlined_call_operand.hbm [shape: f32[16,128], index: 1, kind: input, shape index: {}]   ;;  %s307_s2 = inlined_call_operand.hbm [shape: f32[16,128], index: 2, kind: input, shape index: {}]   ;;  %s308_s3 = inlined_call_operand.hbm [shape: f32[1,8,128], index: 3, kind: output, shape index: {}]  }
   0x1   :  { %9 = vsyncpa [#allocation6], 0 }
   0x2   :  { %10 = vsyncpa [#allocation4], 0  ;;  %s267_s12 = smov [#allocation5]   ;;  %s268_s14 = smov [#allocation2]  }
   0x3   :  { %s40_s13 = sshll.u32 %s267_s12, 4  ;;  %s22_s15 = sshll.u32 %s268_s14, 4  ;;  %s41_s13 = int_to_ptr.vmem [resolvable:$true] %s40_s13  ;;  %s23_s15 = int_to_ptr.vmem [resolvable:$true] %s22_s15 }
   0x4   :  { %s189_s16 = scalar_lea.vmem %s41_s13, 256  ;;  %p194_p1 = scmp.lt.s32.totalorder %s41_s13, %s41_s13 }
   0x5   :  { %p190_p0 = scmp.ne.s32.totalorder %s41_s13, %s189_s16  ;;  %p195_p2 = scmp.lt.s32.totalorder %s189_s16, %s189_s16 }
   0x7   :  { %p196_p3 = por %p195_p2, %p194_p1 }
   0x9   :  { %p197_p4 = pnand %p196_p3, %p190_p0 }
   0xb   :  { %200 = shalt.err (!%p197_p4)
}
   0xc   :  { %s269_s17 = smov 128   ;;  %s270_s18 = smov 8  }
   0xd   :  { %46 = dma.hbm_to_vmem [thread:$0]  %s306_s1, 256, %s41_s13, [#allocation6], %s269_s17, %s269_s17, %s270_s18  }
   0xe   :  { %s209_s21 = scalar_lea.vmem %s23_s15, 256  ;;  %p214_p6 = scmp.lt.s32.totalorder %s23_s15, %s23_s15 }
   0xf   :  { %p210_p5 = scmp.ne.s32.totalorder %s23_s15, %s209_s21  ;;  %p215_p7 = scmp.lt.s32.totalorder %s209_s21, %s209_s21 }
  0x11   :  { %p216_p8 = por %p215_p7, %p214_p6 }
  0x13   :  { %p217_p9 = pnand %p216_p8, %p210_p5 }
  0x15   :  { %220 = shalt.err (!%p217_p9)
}
  0x16   :  { %28 = dma.hbm_to_vmem [thread:$0]  %s305_s0, 256, %s23_s15, [#allocation3], %s269_s17, %s269_s17, %s270_s18  }
  0x17   :  { %s271_s24 = smov [#allocation7]  }
  0x18   :  { %s58_s25 = sshll.u32 %s271_s24, 4  ;;  %s59_s25 = int_to_ptr.vmem [resolvable:$true] %s58_s25 }
  0x19   :  { %s229_s26 = scalar_lea.vmem %s59_s25, 256  ;;  %p234_p11 = scmp.lt.s32.totalorder %s59_s25, %s59_s25 }
  0x1a   :  { %p230_p10 = scmp.ne.s32.totalorder %s59_s25, %s229_s26  ;;  %p235_p12 = scmp.lt.s32.totalorder %s229_s26, %s229_s26 }
  0x1c   :  { %p236_p13 = por %p235_p12, %p234_p11 }
  0x1e   :  { %p237_p0 = pnand %p236_p13, %p230_p10 }
  0x20   :  { %240 = shalt.err (!%p237_p0)
}
  0x21   :  { %64 = dma.hbm_to_vmem [thread:$0]  %s307_s2, 256, %s59_s25, [#allocation6], %s269_s17, %s269_s17, %s270_s18  }
  0x22   :  { %261 = dma.done.wait [#allocation3], 256  }
  0x23   :  { %262 = vsyncadd [#allocation3], 4294967040 }
  0x24   :  { %263 = dma.done.wait [#allocation6], 512  }
  0x25   :  { %264 = vsyncadd [#allocation6], 4294966784  ;;  %v99_v0 = vld [vmem:[#allocation2] sm:$0xff]  ;;  %v100_v1 = vld [vmem:[#allocation2 + $0x8] sm:$0xff]  ;;  %s272_s0 = smov [#allocation8]  }
  0x26   :  { %v101_v2 = vld [vmem:[#allocation5] sm:$0xff]  ;;  %v102_v3 = vld [vmem:[#allocation5 + $0x8] sm:$0xff]  ;;  %v103_v4 = vld [vmem:[#allocation7] sm:$0xff]  ;;  %s158_s2 = sshll.u32 %s272_s0, 4  ;;  %s159_s2 = int_to_ptr.vmem [resolvable:$true] %s158_s2 }
  0x27   :  { %v104_v5 = vld [vmem:[#allocation7 + $0x8] sm:$0xff]  ;;  %v105_v6 = vmul.f32 %v103_v4, %v99_v0  ;;  %v107_v8 = vmul.f32 %v103_v4, %v101_v2  ;;  %s241_s28 = scalar_lea.vmem %s159_s2, 128  ;;  %p246_p2 = scmp.lt.s32.totalorder %s159_s2, %s159_s2 }
  0x28   :  { %v106_v7 = vmul.f32 %v104_v5, %v100_v1  ;;  %v108_v9 = vmul.f32 %v104_v5, %v102_v3  ;;  %p242_p1 = scmp.ne.s32.totalorder %s159_s2, %s241_s28  ;;  %p247_p3 = scmp.lt.s32.totalorder %s241_s28, %s241_s28 }
  0x29   :  { %v109_v10 = vsub.f32 %v105_v6, %v107_v8 }
  0x2a   :  { %v110_v11 = vsub.f32 %v106_v7, %v108_v9  ;;  %p248_p4 = por %p247_p3, %p246_p2 }
  0x2b   :  { %v111_v12 = vand.u32 2147483647, %v109_v10 }
  0x2c   :  { %v112_v13 = vand.u32 2147483647, %v110_v11  ;;  %p249_p5 = pnand %p248_p4, %p242_p1 }
  0x2e   :  { %v113_v14 = vadd.f32 %v112_v13, %v111_v12 }
  0x30   :  { %115 = vst [vmem:[#allocation8] sm:$0xff] %v113_v14 }
  0x31   :  { %252 = shalt.err (!%p249_p5)
}
  0x32   :  { %161 = dma.vmem_to_hbm [thread:$0]  %s159_s2, 128, %s308_s3, [#allocation4]  }
  0x33   :  { %265 = dma.done.wait [#allocation4], 128  }
  0x34   :  { %266 = vsyncadd [#allocation4], 4294967168 }
  0x35   :  { %165 = vsyncpa [#allocation3], 1 }
  0x36   :  { %166 = vsyncpa [#allocation6], 1 }
  0x37   :  { %167 = vsyncpa [#allocation4], 1 }

</bundles_post_ra>
